<compile_context>
chip_gen: v7x
topology: tpu7x:2x2x1
jax: 0.10.0
libtpu: 0.0.40
codegen_flags: <defaults>
</compile_context>

<pallas_src>
import functools

import jax
import jax.numpy as jnp
from jax import lax
from jax.experimental import pallas as pl
from jax.experimental.pallas import tpu as pltpu


# ----------------------------- Pallas kernel ------------------------------ #
def _roberta_text_emb_kernel(
    ids_sm,        # (rows,)   int32  SMEM (scalar prefetch)
    pos_sm,        # (rows,)   int32  SMEM (scalar prefetch)
    word_hbm,      # (V, H)    f32    HBM (pl.ANY)
    pos_hbm,       # (P, H)    f32    HBM (pl.ANY)
    type_ref,      # (T, H)    f32    VMEM (pinned)
    tok_type_ref,  # (tile, 1) int32  VMEM (per-tile block)
    gamma_ref,     # (1, H)    f32    VMEM (pinned)
    beta_ref,      # (1, H)    f32    VMEM (pinned)
    out_ref,       # (tile, H) f32    VMEM (per-tile block)
    word_buf,      # (tile, H) f32    VMEM scratch
    pos_buf,       # (tile, H) f32    VMEM scratch
    sem,           # (2,)      DMA semaphores
    *,
    eps: float,
):
    tile_rows, H = word_buf.shape
    base = pl.program_id(0) * tile_rows

    # ---- issue all row-gather DMAs for this tile (word + position rows) ----
    @pl.loop(0, tile_rows)
    def _issue(r):
        wid = ids_sm[base + r]
        pid = pos_sm[base + r]
        pltpu.make_async_copy(
            word_hbm.at[pl.ds(wid, 1), :], word_buf.at[pl.ds(r, 1), :], sem.at[0]
        ).start()
        pltpu.make_async_copy(
            pos_hbm.at[pl.ds(pid, 1), :], pos_buf.at[pl.ds(r, 1), :], sem.at[1]
        ).start()

    # ---- drain: all copies are equal-sized, so waits on the shared sems
    #      simply consume one row's worth each.
    @pl.loop(0, tile_rows)
    def _drain(r):
        pltpu.make_async_copy(
            word_hbm.at[pl.ds(0, 1), :], word_buf.at[pl.ds(0, 1), :], sem.at[0]
        ).wait()
        pltpu.make_async_copy(
            pos_hbm.at[pl.ds(0, 1), :], pos_buf.at[pl.ds(0, 1), :], sem.at[1]
        ).wait()

    emb = word_buf[...] + pos_buf[...]                          # (tile, H)

    # ---- token-type embedding via VPU selects (T is tiny; no MXU) ----
    tok_type = tok_type_ref[...]                                # (tile, 1) int32
    T = type_ref.shape[0]
    t_emb = jnp.broadcast_to(type_ref[0][None, :], (tile_rows, H))
    for t in range(1, T):                                       # static, small
        row = jnp.broadcast_to(type_ref[t][None, :], (tile_rows, H))
        cond = jnp.broadcast_to(tok_type == t, (tile_rows, H))
        t_emb = jnp.where(cond, row, t_emb)
    emb = emb + t_emb

    # ---- LayerNorm over hidden axis (eps = 1e-12) ----
    mean = jnp.mean(emb, axis=-1, keepdims=True)
    centered = emb - mean
    var = jnp.mean(centered * centered, axis=-1, keepdims=True)
    inv = lax.rsqrt(var + eps)                                  # EUP
    # TODO(synk): dropout is treated as identity (inference / eval mode).
    out_ref[...] = (centered * inv) * gamma_ref[...] + beta_ref[...]


# ------------------------------- wrapper ---------------------------------- #
def image_roberta_text_embeddings(
    input_ids,            # (B, S) int32
    word_table,           # (V, H) f32
    pos_table,            # (P, H) f32
    type_table,           # (T, H) f32
    ln_gamma,             # (H,)  f32
    ln_beta,              # (H,)  f32
    *,
    padding_idx: int,
    past_key_values_length: int = 0,
    token_type_ids=None,  # (B, S) int32 or None
    eps: float = 1e-12,
    tile_rows: int = 256,
):
    B, S = input_ids.shape
    V, H = word_table.shape
    P = pos_table.shape[0]
    T = type_table.shape[0]

    input_ids = input_ids.astype(jnp.int32)
    if token_type_ids is None:
        token_type_ids = jnp.zeros((B, S), dtype=jnp.int32)
    token_type_ids = token_type_ids.astype(jnp.int32)

    # ---- RoBERTa position ids (create_position_ids_from_input_ids),
    #      hoisted out of the kernel: trivial XLA int cumsum. ----
    mask = (input_ids != padding_idx).astype(jnp.int32)
    incremental = (jnp.cumsum(mask, axis=1) + past_key_values_length) * mask
    position_ids = incremental + padding_idx

    # ---- flatten tokens, pad to a whole number of tiles ----
    total = B * S
    tile_rows = max(8, (min(tile_rows, pl.cdiv(total, 8) * 8) // 8) * 8)
    padded = pl.cdiv(total, tile_rows) * tile_rows
    grid = padded // tile_rows

    def pad_flat(x, fill):
        x = x.reshape(total)
        return jnp.pad(x, (0, padded - total), constant_values=fill)

    # Clamp indices so the DMA gather never reads out of bounds.
    ids_flat = jnp.clip(pad_flat(input_ids, padding_idx), 0, V - 1)
    pos_flat = jnp.clip(pad_flat(position_ids, padding_idx), 0, P - 1)
    type_flat = jnp.clip(pad_flat(token_type_ids, 0), 0, T - 1).reshape(padded, 1)

    f32 = jnp.float32
    word_table = word_table.astype(f32)
    pos_table = pos_table.astype(f32)
    type_table = type_table.astype(f32)
    gamma = ln_gamma.reshape(1, H).astype(f32)
    beta = ln_beta.reshape(1, H).astype(f32)

    kernel = functools.partial(_roberta_text_emb_kernel, eps=eps)

    grid_spec = pltpu.PrefetchScalarGridSpec(
        num_scalar_prefetch=2,            # ids_flat, pos_flat -> SMEM
        grid=(grid,),
        in_specs=[
            pl.BlockSpec(memory_space=pl.ANY),                          # word table (HBM)
            pl.BlockSpec(memory_space=pl.ANY),                          # pos  table (HBM)
            pl.BlockSpec((T, H), lambda i, ids, pos: (0, 0)),           # type table (pinned)
            pl.BlockSpec((tile_rows, 1), lambda i, ids, pos: (i, 0)),   # token types
            pl.BlockSpec((1, H), lambda i, ids, pos: (0, 0)),           # gamma (pinned)
            pl.BlockSpec((1, H), lambda i, ids, pos: (0, 0)),           # beta  (pinned)
        ],
        out_specs=pl.BlockSpec((tile_rows, H), lambda i, ids, pos: (i, 0)),
        scratch_shapes=[
            pltpu.VMEM((tile_rows, H), f32),        # gathered word rows
            pltpu.VMEM((tile_rows, H), f32),        # gathered position rows
            pltpu.SemaphoreType.DMA((2,)),
        ],
    )

    out_flat = pl.pallas_call(
        kernel,
        grid_spec=grid_spec,
        out_shape=jax.ShapeDtypeStruct((padded, H), f32),
        compiler_params=pltpu.CompilerParams(
            dimension_semantics=("parallel",)),
    )(ids_flat, pos_flat, word_table, pos_table, type_table, type_flat,
      gamma, beta)

    return out_flat[:total].reshape(B, S, H)


# --------------------------- pure-JAX reference ---------------------------- #
def _reference(input_ids, token_type_ids, word_table, pos_table, type_table,
               gamma, beta, padding_idx, past_len=0, eps=1e-12):
    mask = (input_ids != padding_idx).astype(jnp.int32)
    inc = (jnp.cumsum(mask, axis=1) + past_len) * mask
    position_ids = inc + padding_idx
    emb = (word_table[input_ids]
           + type_table[token_type_ids]
           + pos_table[position_ids])
    mean = emb.mean(-1, keepdims=True)
    var = ((emb - mean) ** 2).mean(-1, keepdims=True)
    normed = (emb - mean) / jnp.sqrt(var + eps)
    return normed * gamma + beta


# ---------------------------------- main ----------------------------------- #
if __name__ == "__main__":
    # Small synthetic config (RoBERTa-like).
    vocab_size = 64
    hidden_size = 32
    max_position_embeddings = 24
    type_vocab_size = 2
    pad_token_id = 1
    B, S = 2, 8

    key = jax.random.PRNGKey(0)
    k_ids, k_tt, k_w, k_p, k_t, k_g, k_b = jax.random.split(key, 7)

    word_table = 0.02 * jax.random.normal(k_w, (vocab_size, hidden_size), jnp.float32)
    word_table = word_table.at[pad_token_id].set(0.0)      # padding_idx row = 0
    pos_table = 0.02 * jax.random.normal(
        k_p, (max_position_embeddings, hidden_size), jnp.float32)
    pos_table = pos_table.at[pad_token_id].set(0.0)        # padding_idx row = 0
    type_table = 0.02 * jax.random.normal(
        k_t, (type_vocab_size, hidden_size), jnp.float32)
    ln_gamma = 1.0 + 0.01 * jax.random.normal(k_g, (hidden_size,), jnp.float32)
    ln_beta = 0.01 * jax.random.normal(k_b, (hidden_size,), jnp.float32)

    # Input ids with padding at the tail of each row; nonzero token types.
    input_ids = jax.random.randint(k_ids, (B, S), 2, vocab_size, dtype=jnp.int32)
    input_ids = input_ids.at[0, 6:].set(pad_token_id)
    input_ids = input_ids.at[1, 5:].set(pad_token_id)
    token_type_ids = jax.random.randint(
        k_tt, (B, S), 0, type_vocab_size, dtype=jnp.int32)

    out = image_roberta_text_embeddings(
        input_ids, word_table, pos_table, type_table, ln_gamma, ln_beta,
        padding_idx=pad_token_id, past_key_values_length=0,
        token_type_ids=token_type_ids, tile_rows=8,   # tile_rows=8 -> grid of 2
    )
    out = jax.block_until_ready(out)

    ref = _reference(input_ids, token_type_ids, word_table, pos_table,
                     type_table, ln_gamma, ln_beta, pad_token_id)
    assert out.shape == (B, S, hidden_size)
    err = float(jnp.max(jnp.abs(out - ref)))
    assert jnp.allclose(out, ref, atol=1e-4, rtol=1e-4), err
    print("KERNEL_OK")
</pallas_src>

<mosaic_0001>
module attributes {stable_mosaic.version = 11 : i64} {
  func.func @_roberta_text_emb_kernel(%arg0: i32, %arg1: memref<16xi32, #tpu.memory_space<smem>>, %arg2: memref<16xi32, #tpu.memory_space<smem>>, %arg3: memref<64x32xf32, #tpu.memory_space<any>>, %arg4: memref<24x32xf32, #tpu.memory_space<any>>, %arg5: memref<2x32xf32, #tpu.memory_space<vmem>>, %arg6: memref<8x1xi32, #tpu.memory_space<vmem>>, %arg7: memref<1x32xf32, #tpu.memory_space<vmem>>, %arg8: memref<1x32xf32, #tpu.memory_space<vmem>>, %arg9: memref<8x32xf32, #tpu.memory_space<vmem>>, %arg10: memref<8x32xf32, #tpu.memory_space<vmem>>, %arg11: memref<8x32xf32, #tpu.memory_space<vmem>>, %arg12: memref<2x!tpu.dma_semaphore, #tpu.memory_space<semaphore_mem>>) attributes {dimension_semantics = [#tpu.dimension_semantics<parallel>], iteration_bounds = array<i64: 2>, scalar_prefetch = 2 : i64, scratch_operands = 3 : i64, tpu.core_type = #tpu.core_type<tc>, window_params = [{}, {}, {pipeline_mode = #tpu.pipeline_mode<synchronous>, transform_indices = @transform_2, window_bounds = array<i64: 2, 32>}, {transform_indices = @transform_3, window_bounds = array<i64: 8, 1>}, {pipeline_mode = #tpu.pipeline_mode<synchronous>, transform_indices = @transform_4, window_bounds = array<i64: 1, 32>}, {pipeline_mode = #tpu.pipeline_mode<synchronous>, transform_indices = @transform_5, window_bounds = array<i64: 1, 32>}, {transform_indices = @transform_6, window_bounds = array<i64: 8, 32>}]} {
    %c8_i32 = arith.constant 8 : i32
    %0 = arith.muli %arg0, %c8_i32 : i32
    %c0_i32 = arith.constant 0 : i32
    %c8_i32_0 = arith.constant 8 : i32
    %1 = arith.addi %c0_i32, %c8_i32_0 : i32
    %c1_i32 = arith.constant 1 : i32
    scf.for %arg13 = %c0_i32 to %1 step %c1_i32  : i32 {
      %c1_i32_24 = arith.constant 1 : i32
      %46 = arith.muli %arg13, %c1_i32_24 : i32
      %c0_i32_25 = arith.constant 0 : i32
      %47 = arith.addi %c0_i32_25, %46 : i32
      %48 = arith.addi %0, %47 : i32
      %49 = arith.index_cast %48 : i32 to index
      %50 = memref.load %arg1[%49] : memref<16xi32, #tpu.memory_space<smem>>
      %51 = arith.addi %0, %47 : i32
      %52 = arith.index_cast %51 : i32 to index
      %53 = memref.load %arg2[%52] : memref<16xi32, #tpu.memory_space<smem>>
      %c0_i32_26 = arith.constant 0 : i32
      %c0_i32_27 = arith.constant 0 : i32
      %54 = tpu.memref_slice %arg3[%50, %c0_i32_27] : memref<64x32xf32, #tpu.memory_space<any>> -> memref<1x32xf32, #tpu.memory_space<any>>
      %c0_i32_28 = arith.constant 0 : i32
      %55 = tpu.memref_slice %arg10[%47, %c0_i32_28] : memref<8x32xf32, #tpu.memory_space<vmem>> -> memref<1x32xf32, #tpu.memory_space<vmem>>
      %56 = tpu.memref_slice %arg12[%c0_i32_26] : memref<2x!tpu.dma_semaphore, #tpu.memory_space<semaphore_mem>> -> memref<1x!tpu.dma_semaphore, #tpu.memory_space<semaphore_mem>>
      %57 = tpu.memref_squeeze %56 : memref<1x!tpu.dma_semaphore, #tpu.memory_space<semaphore_mem>> -> memref<!tpu.dma_semaphore, #tpu.memory_space<semaphore_mem>>
      tpu.enqueue_dma source(%54 : memref<1x32xf32, #tpu.memory_space<any>>) target(%55 : memref<1x32xf32, #tpu.memory_space<vmem>>) target_semaphore(%57 : memref<!tpu.dma_semaphore, #tpu.memory_space<semaphore_mem>>)
      %c1_i32_29 = arith.constant 1 : i32
      %c0_i32_30 = arith.constant 0 : i32
      %58 = tpu.memref_slice %arg4[%53, %c0_i32_30] : memref<24x32xf32, #tpu.memory_space<any>> -> memref<1x32xf32, #tpu.memory_space<any>>
      %c0_i32_31 = arith.constant 0 : i32
      %59 = tpu.memref_slice %arg11[%47, %c0_i32_31] : memref<8x32xf32, #tpu.memory_space<vmem>> -> memref<1x32xf32, #tpu.memory_space<vmem>>
      %60 = tpu.memref_slice %arg12[%c1_i32_29] : memref<2x!tpu.dma_semaphore, #tpu.memory_space<semaphore_mem>> -> memref<1x!tpu.dma_semaphore, #tpu.memory_space<semaphore_mem>>
      %61 = tpu.memref_squeeze %60 : memref<1x!tpu.dma_semaphore, #tpu.memory_space<semaphore_mem>> -> memref<!tpu.dma_semaphore, #tpu.memory_space<semaphore_mem>>
      tpu.enqueue_dma source(%58 : memref<1x32xf32, #tpu.memory_space<any>>) target(%59 : memref<1x32xf32, #tpu.memory_space<vmem>>) target_semaphore(%61 : memref<!tpu.dma_semaphore, #tpu.memory_space<semaphore_mem>>)
    }
    %c8_i32_1 = arith.constant 8 : i32
    %c0_i32_2 = arith.constant 0 : i32
    %c8_i32_3 = arith.constant 8 : i32
    %2 = arith.addi %c0_i32_2, %c8_i32_3 : i32
    %c1_i32_4 = arith.constant 1 : i32
    scf.for %arg13 = %c0_i32_2 to %2 step %c1_i32_4  : i32 {
      %c0_i32_24 = arith.constant 0 : i32
      %c0_i32_25 = arith.constant 0 : i32
      %c0_i32_26 = arith.constant 0 : i32
      %46 = tpu.memref_slice %arg3[%c0_i32_25, %c0_i32_26] : memref<64x32xf32, #tpu.memory_space<any>> -> memref<1x32xf32, #tpu.memory_space<any>>
      %c0_i32_27 = arith.constant 0 : i32
      %c0_i32_28 = arith.constant 0 : i32
      %47 = tpu.memref_slice %arg10[%c0_i32_27, %c0_i32_28] : memref<8x32xf32, #tpu.memory_space<vmem>> -> memref<1x32xf32, #tpu.memory_space<vmem>>
      %48 = tpu.memref_slice %arg12[%c0_i32_24] : memref<2x!tpu.dma_semaphore, #tpu.memory_space<semaphore_mem>> -> memref<1x!tpu.dma_semaphore, #tpu.memory_space<semaphore_mem>>
      %49 = tpu.memref_squeeze %48 : memref<1x!tpu.dma_semaphore, #tpu.memory_space<semaphore_mem>> -> memref<!tpu.dma_semaphore, #tpu.memory_space<semaphore_mem>>
      tpu.wait_dma2 semaphore(%49 : memref<!tpu.dma_semaphore, #tpu.memory_space<semaphore_mem>>) src(%46 : memref<1x32xf32, #tpu.memory_space<any>>) dst(%47 : memref<1x32xf32, #tpu.memory_space<vmem>>)
      %c1_i32_29 = arith.constant 1 : i32
      %c0_i32_30 = arith.constant 0 : i32
      %c0_i32_31 = arith.constant 0 : i32
      %50 = tpu.memref_slice %arg4[%c0_i32_30, %c0_i32_31] : memref<24x32xf32, #tpu.memory_space<any>> -> memref<1x32xf32, #tpu.memory_space<any>>
      %c0_i32_32 = arith.constant 0 : i32
      %c0_i32_33 = arith.constant 0 : i32
      %51 = tpu.memref_slice %arg11[%c0_i32_32, %c0_i32_33] : memref<8x32xf32, #tpu.memory_space<vmem>> -> memref<1x32xf32, #tpu.memory_space<vmem>>
      %52 = tpu.memref_slice %arg12[%c1_i32_29] : memref<2x!tpu.dma_semaphore, #tpu.memory_space<semaphore_mem>> -> memref<1x!tpu.dma_semaphore, #tpu.memory_space<semaphore_mem>>
      %53 = tpu.memref_squeeze %52 : memref<1x!tpu.dma_semaphore, #tpu.memory_space<semaphore_mem>> -> memref<!tpu.dma_semaphore, #tpu.memory_space<semaphore_mem>>
      tpu.wait_dma2 semaphore(%53 : memref<!tpu.dma_semaphore, #tpu.memory_space<semaphore_mem>>) src(%50 : memref<1x32xf32, #tpu.memory_space<any>>) dst(%51 : memref<1x32xf32, #tpu.memory_space<vmem>>)
    }
    %c0 = arith.constant 0 : index
    %c0_5 = arith.constant 0 : index
    %3 = vector.load %arg10[%c0, %c0_5] : memref<8x32xf32, #tpu.memory_space<vmem>>, vector<8x32xf32>
    %c0_6 = arith.constant 0 : index
    %c0_7 = arith.constant 0 : index
    %4 = vector.load %arg11[%c0_6, %c0_7] : memref<8x32xf32, #tpu.memory_space<vmem>>, vector<8x32xf32>
    %5 = arith.addf %3, %4 : vector<8x32xf32>
    %c0_8 = arith.constant 0 : index
    %c0_9 = arith.constant 0 : index
    %6 = vector.load %arg6[%c0_8, %c0_9] : memref<8x1xi32, #tpu.memory_space<vmem>>, vector<8x1xi32>
    %c0_10 = arith.constant 0 : index
    %c0_11 = arith.constant 0 : index
    %7 = vector.load %arg5[%c0_10, %c0_11] : memref<2x32xf32, #tpu.memory_space<vmem>>, vector<1x32xf32>
    %8 = vector.shape_cast %7 : vector<1x32xf32> to vector<32xf32>
    %9 = vector.shape_cast %8 : vector<32xf32> to vector<1x32xf32>
    %10 = vector.shape_cast %9 : vector<1x32xf32> to vector<1x32xf32>
    %11 = vector.broadcast %10 : vector<1x32xf32> to vector<8x32xf32>
    %c1 = arith.constant 1 : index
    %c0_12 = arith.constant 0 : index
    %12 = vector.load %arg5[%c1, %c0_12] : memref<2x32xf32, #tpu.memory_space<vmem>>, vector<1x32xf32>
    %13 = vector.shape_cast %12 : vector<1x32xf32> to vector<32xf32>
    %14 = vector.shape_cast %13 : vector<32xf32> to vector<1x32xf32>
    %15 = vector.shape_cast %14 : vector<1x32xf32> to vector<1x32xf32>
    %16 = vector.broadcast %15 : vector<1x32xf32> to vector<8x32xf32>
    %c1_i32_13 = arith.constant 1 : i32
    %17 = vector.broadcast %c1_i32_13 : i32 to vector<8x1xi32>
    %18 = arith.cmpi eq, %6, %17 : vector<8x1xi32>
    %19 = vector.shape_cast %18 : vector<8x1xi1> to vector<8x1xi1>
    %20 = vector.broadcast %19 : vector<8x1xi1> to vector<8x32xi1>
    %21 = arith.select %20, %16, %11 : vector<8x32xi1>, vector<8x32xf32>
    %22 = arith.addf %5, %21 : vector<8x32xf32>
    %cst = arith.constant dense<0.000000e+00> : vector<8xf32>
    %23 = vector.multi_reduction <add>, %22, %cst [1] : vector<8x32xf32> to vector<8xf32>
    %24 = vector.shape_cast %23 : vector<8xf32> to vector<8x1xf32>
    %cst_14 = arith.constant 3.200000e+01 : f32
    %25 = vector.broadcast %cst_14 : f32 to vector<8x1xf32>
    %26 = arith.divf %24, %25 : vector<8x1xf32>
    %27 = vector.broadcast %26 : vector<8x1xf32> to vector<8x32xf32>
    %28 = arith.subf %22, %27 : vector<8x32xf32>
    %29 = arith.mulf %28, %28 : vector<8x32xf32>
    %cst_15 = arith.constant dense<0.000000e+00> : vector<8xf32>
    %30 = vector.multi_reduction <add>, %29, %cst_15 [1] : vector<8x32xf32> to vector<8xf32>
    %31 = vector.shape_cast %30 : vector<8xf32> to vector<8x1xf32>
    %cst_16 = arith.constant 3.200000e+01 : f32
    %32 = vector.broadcast %cst_16 : f32 to vector<8x1xf32>
    %33 = arith.divf %31, %32 : vector<8x1xf32>
    %cst_17 = arith.constant 9.99999996E-13 : f32
    %34 = vector.broadcast %cst_17 : f32 to vector<8x1xf32>
    %35 = arith.addf %33, %34 : vector<8x1xf32>
    %36 = math.rsqrt %35 : vector<8x1xf32>
    %37 = vector.broadcast %36 : vector<8x1xf32> to vector<8x32xf32>
    %38 = arith.mulf %28, %37 : vector<8x32xf32>
    %c0_18 = arith.constant 0 : index
    %c0_19 = arith.constant 0 : index
    %39 = vector.load %arg7[%c0_18, %c0_19] : memref<1x32xf32, #tpu.memory_space<vmem>>, vector<1x32xf32>
    %40 = vector.broadcast %39 : vector<1x32xf32> to vector<8x32xf32>
    %41 = arith.mulf %38, %40 : vector<8x32xf32>
    %c0_20 = arith.constant 0 : index
    %c0_21 = arith.constant 0 : index
    %42 = vector.load %arg8[%c0_20, %c0_21] : memref<1x32xf32, #tpu.memory_space<vmem>>, vector<1x32xf32>
    %43 = vector.broadcast %42 : vector<1x32xf32> to vector<8x32xf32>
    %44 = arith.addf %41, %43 : vector<8x32xf32>
    %c0_22 = arith.constant 0 : index
    %c0_23 = arith.constant 0 : index
    %45 = vector.load %arg9[%c0_22, %c0_23] : memref<8x32xf32, #tpu.memory_space<vmem>>, vector<8x32xf32>
    tpu.vector_store %arg9[%c0_22, %c0_23], %44 {strides = array<i32>} : memref<8x32xf32, #tpu.memory_space<vmem>>, vector<8x32xf32>,
    return
  }
  func.func @transform_2(%arg0: i32, %arg1: memref<16xi32, #tpu.memory_space<smem>>, %arg2: memref<16xi32, #tpu.memory_space<smem>>) -> (i32, i32) {
    %c0_i32 = arith.constant 0 : i32
    %c0_i32_0 = arith.constant 0 : i32
    %c0_i32_1 = arith.constant 0 : i32
    return %c0_i32, %c0_i32_0 : i32, i32
  }
  func.func @transform_3(%arg0: i32, %arg1: memref<16xi32, #tpu.memory_space<smem>>, %arg2: memref<16xi32, #tpu.memory_space<smem>>) -> (i32, i32) {
    %c0_i32 = arith.constant 0 : i32
    %c0_i32_0 = arith.constant 0 : i32
    return %arg0, %c0_i32 : i32, i32
  }
  func.func @transform_4(%arg0: i32, %arg1: memref<16xi32, #tpu.memory_space<smem>>, %arg2: memref<16xi32, #tpu.memory_space<smem>>) -> (i32, i32) {
    %c0_i32 = arith.constant 0 : i32
    %c0_i32_0 = arith.constant 0 : i32
    %c0_i32_1 = arith.constant 0 : i32
    return %c0_i32, %c0_i32_0 : i32, i32
  }
  func.func @transform_5(%arg0: i32, %arg1: memref<16xi32, #tpu.memory_space<smem>>, %arg2: memref<16xi32, #tpu.memory_space<smem>>) -> (i32, i32) {
    %c0_i32 = arith.constant 0 : i32
    %c0_i32_0 = arith.constant 0 : i32
    %c0_i32_1 = arith.constant 0 : i32
    return %c0_i32, %c0_i32_0 : i32, i32
  }
  func.func @transform_6(%arg0: i32, %arg1: memref<16xi32, #tpu.memory_space<smem>>, %arg2: memref<16xi32, #tpu.memory_space<smem>>) -> (i32, i32) {
    %c0_i32 = arith.constant 0 : i32
    %c0_i32_0 = arith.constant 0 : i32
    return %arg0, %c0_i32 : i32, i32
  }
}

</mosaic_0001>

<bundles_post_ra>
// kernel: tpu_custom_call.1
= control target key start
LH: loop header
LB: loop body
LE: loop exit
PB: predicated region body
PF: predicated region fallthrough
CT: control target
= control target key end

     0   :  { %s875_s0 = inlined_call_operand.vmem [shape: s32[16], index: 0, kind: input, shape index: {}]   ;;  %s876_s2 = inlined_call_operand.vmem [shape: f32[64,32], index: 2, kind: input, shape index: {}]   ;;  %s877_s3 = inlined_call_operand.vmem [shape: f32[24,32], index: 3, kind: input, shape index: {}]   ;;  %s878_s4 = inlined_call_operand.vmem [shape: f32[2,32], index: 4, kind: input, shape index: {}]   ;;  %s879_s5 = inlined_call_operand.vmem [shape: s32[16,1], index: 5, kind: input, shape index: {}]   ;;  %s880_s6 = inlined_call_operand.vmem [shape: f32[1,32], index: 6, kind: input, shape index: {}]   ;;  %s881_s7 = inlined_call_operand.vmem [shape: f32[1,32], index: 7, kind: input, shape index: {}]   ;;  %s882_s8 = inlined_call_operand.hbm [shape: f32[16,32], index: 8, kind: output, shape index: {}]   ;;  %s883_s1 = inlined_call_operand.vmem [shape: s32[16], index: 1, kind: input, shape index: {}]  }
   0x1   :  { %s13_s29 = sshll.u32 %s875_s0, 4  ;;  %s17_s10 = sshll.u32 %s883_s1, 4  ;;  %s14_s29 = int_to_ptr.vmem [resolvable:$true] %s13_s29  ;;  %s18_s10 = int_to_ptr.vmem [resolvable:$true] %s17_s10 }
   0x2   :  { %s574_s11 = scalar_lea.vmem %s14_s29, 16  ;;  %p579_p1 = scmp.lt.s32.totalorder %s14_s29, %s14_s29 }
   0x3   :  { %p575_p0 = scmp.ne.s32.totalorder %s14_s29, %s574_s11  ;;  %p580_p2 = scmp.lt.s32.totalorder %s574_s11, %s574_s11 }
   0x5   :  { %p581_p3 = por %p580_p2, %p579_p1 }
   0x7   :  { %p582_p4 = pnand %p581_p3, %p575_p0 }
   0x9   :  { %585 = shalt.err (!%p582_p4)  }
   0xa   :  { %s684_s12 = smov [#allocation6]   ;;  %s586_s13 = scalar_lea.vmem %s18_s10, 16 }
   0xb   :  { %16 = dma.vmem_to_smem %s14_s29, 16, %s684_s12, [#allocation5] }
   0xc   :  { %p587_p5 = scmp.ne.s32.totalorder %s18_s10, %s586_s13  ;;  %p591_p6 = scmp.lt.s32.totalorder %s18_s10, %s18_s10 }
   0xd   :  { %p592_p7 = scmp.lt.s32.totalorder %s586_s13, %s586_s13 }
   0xf   :  { %p593_p8 = por %p592_p7, %p591_p6 }
  0x11   :  { %p594_p9 = pnand %p593_p8, %p587_p5 }
  0x13   :  { %597 = shalt.err (!%p594_p9)  }
  0x14   :  { %s685_s0 = smov [#allocation7]  }
  0x15   :  { %20 = dma.vmem_to_smem %s18_s10, 16, %s685_s0, [#allocation5] }
  0x16   :  { %650 = dma.done.wait [#allocation5], 32 }
  0x17   :  { %651 = vsyncadd [#allocation5], 4294967264 }
  0x18   :  { %22 = sfence }
  0x19   :  { %23 = vsyncpa [#allocation9], 0 }
  0x1a   :  { %25 = vsyncpa [#allocation9 + $0x1], 0  ;;  %s739_s1 = smov 0   ;;  %s741_s14 = smov 0  }
  0x1b   :  { %s743_s15 = smov 0   ;;  %s745_s16 = smov 0  }
  0x1c LB: > { %s760_s17 = sadd.s32 4294967295, %s674_s16   ;;  %s496_s18 = sadd.s32 4294967294, %s674_s16   ;;  %s674_s16 = sphi %s745_s16, %s893_s16   ;;  %s670_s15 = sphi %s743_s15, %s892_s15   ;;  %s666_s14 = sphi %s741_s14, %s891_s14   ;;  %s662_s1 = sphi %s739_s1, %s890_s1  }
  0x1d   : > { %s764_s19 = sadd.s32 1, %s674_s16   ;;  %s127_s20 = sadd.s32 1, %s670_s15 }
  0x1e   : > { %s124_s21 = ssub.s32 %s674_s16, %s764_s19  ;;  %p137_p10 = scmp.ne.s32.totalorder %s670_s15, %s666_s14 }
  0x1f   : > { %p125_p11 = scmp.eq.s32.totalorder %s124_s21, 0  ;;  %p138_p12 = scmp.eq.s32.totalorder %s760_s17, 1 }
  0x20   : > { %p143_p13 = scmp.ne.s32.totalorder %s666_s14, %s662_s1  ;;  %p144_p0 = scmp.eq.s32.totalorder %s496_s18, 1 }
  0x21   : > { %s775_s22 = scalar_select %p125_p11, %s670_s15, %s127_s20  }
  0x22   : > { %p777_p1 = por %p138_p12, %p137_p10  ;;  %p781_p2 = por %p144_p0, %p143_p13 }
  0x23   : > { %885 = sst [smem:[#allocation16_spill]] %s775_s22  ;;  %p499_p3 = scmp.ge.s32.totalorder %s674_s16, 1 }
  0x24   : > { %p178_p4 = scmp.lt.s32.totalorder %s674_s16, 3 }
  0x26   : > { %p179_p5 = pnand %p499_p3, %p178_p4 }
  0x27   : > { %s884_s25 = sand.u32 (!%p179_p5), 1, %s666_s14   ;;  %p203_p6 = scmp.lt.s32.totalorder (!%p179_p5), %s760_s17, 1 }
  0x28   : > { %182 = sbr.rel (%p179_p5) target bundleno = 541 (0x21d), region = 36  ;;  %s791_s26 = sshll.u32 (!%p179_p5), %s884_s25, 3 }
  0x29   : > { %s502_s27 = sshll.u32 (!%p179_p5), %s760_s17, 3  ;;  %s202_s11 = scalar_lea.vmem (!%p179_p5), [#allocation8], %s791_s26 }
  0x2a   : > { %s676_s12 = smov (!%p179_p5), 0  }
  0x2f   : > { %s204_s28 = scalar_select %p203_p6, %s760_s17, 1 }
  0x31   : > { %s501_s29 = sshll.u32 %s204_s28, 3 }
  0x32   : > { %s798_s10 = scalar_lea.vmem %s879_s5, %s501_s29 }
  0x33 LB: >> { %s214_s13 = sadd.s32 %s678_s12, %s502_s27  ;;  %s218_s22 = scalar_lea.vmem [#allocation2], %s678_s12  ;;  %s678_s12 = sphi %s676_s12, %s213_s12  }
  0x34   : >> { %s215_s0 = sld [smem:[#allocation6 + %s214_s13]] }
  0x35   : >> { %s216_s18 = sld [smem:[#allocation7 + %s214_s13]] }
  0x3a   : >> { %s217_s25 = scalar_lea.vmem %s876_s2, %s215_s0 }
  0x3b   : >> { %v236_v0 = vld [vmem:[%s217_s25] sm:$0x1] }
  0x3c   : >> { %237 = vst [vmem:[%s218_s22] sm:$0x1] %v236_v0 }
  0x3d   : >> { %262 = vsyncadd [#allocation4], 16  ;;  %s263_s29 = scalar_lea.vmem %s877_s3, %s216_s18  ;;  %s264_s9 = scalar_lea.vmem [#allocation3], %s678_s12 }
  0x3e   : >> { %v283_v1 = vld [vmem:[%s263_s29] sm:$0x1] }
  0x3f   : >> { %284 = vst [vmem:[%s264_s9] sm:$0x1] %v283_v1 }
  0x40   : >> { %309 = vsyncadd [#allocation4 + $0x1], 16  ;;  %s213_s12 = sadd.s32 1, %s678_s12  }
  0x41   : >> { %p210_p7 = scmp.ge.s32.totalorder %s213_s12, 8  }
  0x42   : > { %s680_s13 = smov (%p210_p7), 0  }
  0x43   : > { %212 = sbr.rel (!%p210_p7) target bundleno = 51 (0x33), region = 172 }
  0x4a LB: >> { %652 = dma.done.wait [#allocation4], 16  ;;  %s682_s13 = sphi %s680_s13, %s315_s13  }
  0x4b   : >> { %653 = vsyncadd [#allocation4], 4294967280 }
  0x4c   : >> { %654 = dma.done.wait [#allocation4 + $0x1], 16 }
  0x4d   : >> { %655 = vsyncadd [#allocation4 + $0x1], 4294967280  ;;  %s315_s13 = sadd.s32 1, %s682_s13  }
  0x4e   : >> { %p312_p8 = scmp.ge.s32.totalorder %s315_s13, 8  }
  0x4f   : > { %v325_v2 = vld [vmem:[%s798_s10] sm:$0xff] (%p312_p8)  ;;  %v686_v3 = vmov (%p312_p8), 0   ;;  %v323_v6 = vld [vmem:[#allocation3] sm:$0xff] (%p312_p8)  ;;  %vm344_vm2 = vcmask (%p312_p8), 261120   ;;  %s508_s21 = sshll.u32 (%p312_p8), %s760_s17, 7  ;;  %s390_s28 = sshll.u32 (%p312_p8), %s202_s11, 4  ;;  %s830_s28 = int_to_ptr.vmem [resolvable:$true] %s390_s28 }
  0x50   : > { %314 = sbr.rel (!%p312_p8) target bundleno = 74 (0x4a), region = 183  ;;  %571 = vset.pattern.permute.xlu0 (%p312_p8), %v686_v3  ;;  %vm336_vm0 = vcmp.eq.s32.totalorder (%p312_p8), %v325_v2, 1  ;;  %v322_v5 = vld [vmem:[#allocation2] sm:$0xff] (%p312_p8)  ;;  %s828_s9 = scalar_lea.hbm (%p312_p8), %s882_s8, %s508_s21 }
  0x51   : > { %v337_v4 = vsel (%p312_p8), %vm336_vm0, 1, %v686_v3  ;;  %v503_v7 = vld [vmem:[%s878_s4] ss:$0 sm:$0xff] (%p312_p8)  ;;  %v504_v8 = vld [vmem:[%s878_s4 + $0x1] ss:$0 sm:$0xff] (%p312_p8)  ;;  %v324_v9 = vadd.f32 (%p312_p8), %v323_v6, %v322_v5  ;;  %s888_s13 = sand.u32 (%p312_p8), 1, %s666_s14  }
  0x52   : > { %339 = vperm.xlu0 (%p312_p8), %571, %v337_v4   ;;  %v505_v23 = vld [vmem:[%s880_s6] ss:$0 sm:$0xff] (%p312_p8)  ;;  %s377_s22 = scalar_lea.sflag (%p312_p8), [#allocation9], %s888_s13  ;;  %s598_s17 = scalar_lea.vmem (%p312_p8), %s830_s28, 128 }
  0x53   : > { %v506_v25 = vld [vmem:[%s881_s7] ss:$0 sm:$0xff] (%p312_p8)  ;;  %p599_p9 = scmp.ne.s32.totalorder (%p312_p8), %s830_s28, %s598_s17  ;;  %s687_s25 = smov (%p312_p8), [#allocation8]  }
  0x54   : > { %s602_s27 = sshll.u32 (%p312_p8), %s687_s25, 4  ;;  %s603_s27 = int_to_ptr.vmem [resolvable:$false] %s602_s27 }
  0x55   : > { %p600_p10 = pnand (%p312_p8), %p599_p9, %p777_p1  ;;  %s604_s12 = scalar_lea.vmem (%p312_p8), %s603_s27, 256 }
  0x56   : > { %p605_p12 = scmp.lt.s32.totalorder (%p312_p8), %s830_s28, %s603_s27  ;;  %p606_p13 = scmp.lt.s32.totalorder (%p312_p8), %s604_s12, %s598_s17 }
  0x57   : > { %p601_p11 = pneg %p600_p10 }
  0x58   : > { %p607_p0 = por %p606_p13, %p605_p12 }
  0x5a   : > { %p608_p3 = pnand %p607_p0, %p601_p11 }
  0xd1   : > { %v340_v10 = vpop.permute.xlu0 %339 }
  0xd2   : > { %vm341_vm1 = vcmp.eq.s32.totalorder %v340_v10, 1 }
  0xd3   : > { %v342_v11 = vsel %vm341_vm1, %v504_v8, %v503_v7 }
  0xd4   : > { %v343_v12 = vadd.f32 %v342_v11, %v324_v9 }
  0xd6   : > { %v345_v13 = vsel %vm344_vm2, %v343_v12, 0.0 }
  0xd7   : > { %346 = vadd.xlane.f32.xlu0 %v345_v13 }
 0x164   : > { %v347_v14 = vpop.xlane.xlu0 %346 }
 0x165   : > { %v349_v15 = vmul.f32 0.03125, %v347_v14 }
 0x167   : > { %v350_v16 = vsub.f32 %v343_v12, %v349_v15 }
 0x169   : > { %v351_v17 = vmul.f32 %v350_v16, %v350_v16 }
 0x16b   : > { %v352_v18 = vsel %vm344_vm2, %v351_v17, 0.0 }
 0x16c   : > { %353 = vadd.xlane.f32.xlu1 %v352_v18 }
 0x1f9   : > { %v354_v19 = vpop.xlane.xlu1 %353 }
 0x1fa   : > { %v355_v20 = vmul.f32 0.03125, %v354_v19 }
 0x1fc   : > { %v356_v21 = vadd.f32 1e-12, %v355_v20 }
 0x1fe   : > { %572 = vrsqrt.f32 %v356_v21 }
 0x208   : > { %v573_v22 = vpop.eup %572 }
 0x209   : > { %v358_v24 = vmul.f32 %v573_v22, %v350_v16 }
 0x20b   : > { %v366_v26 = vmul.f32 %v505_v23, %v358_v24 }
 0x20d   : > { %v374_v27 = vadd.f32 %v506_v25, %v366_v26 }
 0x20f   : > { %375 = vst.msk [vmem:[%s202_s11] sm:$0xff] %vm344_vm2, %v374_v27 }
 0x210   : > { %611 = shalt.err (!%p608_p3)
}
 0x211   : > { %s612_s26 = scalar_lea.hbm %s828_s9, 128  ;;  %s616_s0 = scalar_lea.hbm %s882_s8, 256 }
 0x212   : > { %p613_p4 = scmp.ne.s32.totalorder %s828_s9, %s612_s26  ;;  %p617_p7 = scmp.lt.u32.totalorder %s828_s9, %s882_s8 }
 0x213   : > { %p618_p8 = scmp.lt.u32.totalorder %s616_s0, %s612_s26  ;;  %p620_p10 = scmp.lt.u32.totalorder %s612_s26, %s828_s9 }
 0x214   : > { %p614_p5 = pnand %p613_p4, %p777_p1 }
 0x215   : > { %p619_p9 = por %p618_p8, %p617_p7 }
 0x216   : > { %p615_p6 = pneg %p614_p5 }
 0x217   : > { %p621_p11 = por %p620_p10, %p619_p9 }
 0x219   : > { %p622_p12 = pnand %p621_p11, %p615_p6 }
 0x21b   : > { %625 = shalt.err (!%p622_p12)
}
 0x21c   : > { %513 = dma.vmem_to_hbm [thread:$0]  (%p777_p1), %s830_s28, 128, %s828_s9, %s377_s22  }
 0x21d PF: > { %p519_p13 = scmp.ge.s32.totalorder %s674_s16, 2  ;;  %s402_s21 = sand.u32 1, %s662_s1  }
 0x21e   : > { %s403_s30 = scalar_lea.sflag [#allocation9], %s402_s21 }
 0x21f   : > { %p516_p0 = pnand %p519_p13, %p781_p2 }
 0x221   : > { %657 = dma.done.wait (!%p516_p0), %s403_s30, 128  }
 0x222   : > { %659 = vsyncadd (!%p516_p0), %s403_s30, 4294967168  ;;  %s889_s29 = sld [smem:[#allocation16_spill]]  ;;  %p28_p3 = scmp.ge.s32.totalorder %s764_s19, 4  }
 0x223   : > { %s890_s1 = smov %s666_s14  ;;  %s891_s14 = smov %s670_s15 }
 0x224   : > { %s893_s16 = smov %s764_s19  ;;  %30 = sbr.rel (!%p28_p3) target bundleno = 28 (0x1c), region = 194 }
 0x228   : > { %s892_s15 = smov %s889_s29 }
 0x22b   :  { %408 = vsyncpa [#allocation9], 1 }
 0x22c   :  { %410 = vsyncpa [#allocation9 + $0x1], 1 }
 0x22d   :  { %411 = vsyncmov [#allocation4] }
 0x230   :  { %s412_s16 = vpop.sfrf %411 }
 0x231   :  { %p511_p1 = scmp.ne.s32.totalorder %s412_s16, 0 }
 0x233   :  { %416 = shalt.err (%p511_p1)  }
 0x234   :  { %418 = vsyncmov [#allocation4 + $0x1] }
 0x237   :  { %s419_s23 = vpop.sfrf %418 }
 0x238   :  { %p512_p2 = scmp.ne.s32.totalorder %s419_s23, 0 }
 0x23a   :  { %423 = shalt.err (%p512_p2)  }

</bundles_post_ra>
